<compile_context>
chip_gen: v6e
topology: v6e:2x2x1
jax: 0.10.0
libtpu: 0.0.40
codegen_flags: <defaults>
</compile_context>

<pallas_src>
import math
from functools import partial

import jax
import jax.numpy as jnp
from jax.experimental import pallas as pl
from jax.experimental.pallas import tpu as pltpu

# Hidden layer widths of the autoencoder (first_size is prepended/appended).
_HIDDEN = [90, 40, 15, 7, 15, 40, 90]
_LANE = 128            # internal feature dims padded to the TPU lane width
_DEFAULT_TB = 2048     # default batch tile (rows per grid step), multiple of 8


# ----------------------------------------------------------------------------
# Kernel
# ----------------------------------------------------------------------------
def _autoencoder_kernel(x_ref, wf_ref, wm_ref, wl_ref, bm_ref, bl_ref, o_ref):
    """One batch tile through all 8 Linear+ReLU layers.

    x_ref:  (TB, F)        input dtype (any float)
    wf_ref: (F, 128)       bf16  first weight, output lanes zero-padded
    wm_ref: (6, 128, 128)  bf16  layers 2..7, zero-padded both dims
    wl_ref: (128, F)       bf16  last weight, input lanes zero-padded
    bm_ref: (7, 1, 128)    f32   biases of layers 1..7, zero-padded
    bl_ref: (1, F)         f32   bias of layer 8
    o_ref:  (TB, F)        output dtype (bf16 by default)
    """
    # Activations travel in bf16 (matches the bf16 MXU inputs; halves VMEM
    # vld/vst bytes between layers).  Accumulation is always f32.
    h = x_ref[...].astype(jnp.bfloat16)

    # Layer 1: F -> 128 lanes (logical 90; padded lanes are exactly 0).
    acc = jnp.dot(h, wf_ref[...], preferred_element_type=jnp.float32)
    h = jnp.maximum(acc + bm_ref[0], 0.0).astype(jnp.bfloat16)

    # Layers 2..7: packed 128x128 padded weights.
    for i in range(wm_ref.shape[0]):
        acc = jnp.dot(h, wm_ref[i], preferred_element_type=jnp.float32)
        h = jnp.maximum(acc + bm_ref[i + 1], 0.0).astype(jnp.bfloat16)

    # Layer 8: 128 -> F; bias + ReLU in f32, store in output dtype.
    acc = jnp.dot(h, wl_ref[...], preferred_element_type=jnp.float32)
    o_ref[...] = jnp.maximum(acc + bl_ref[...], 0.0).astype(o_ref.dtype)


# ----------------------------------------------------------------------------
# Parameters
# ----------------------------------------------------------------------------
def make_params(first_size, key, dtype=jnp.float32):
    """PyTorch-style uniform(-1/sqrt(fan_in), +1/sqrt(fan_in)) init.

    Returns a list of 8 (weight[in,out], bias[out]) in logical (unpadded)
    layout."""
    dims = [first_size] + _HIDDEN + [first_size]
    params = []
    for i in range(len(dims) - 1):
        fan_in, fan_out = dims[i], dims[i + 1]
        key, kw, kb = jax.random.split(key, 3)
        bound = 1.0 / math.sqrt(fan_in)
        w = jax.random.uniform(kw, (fan_in, fan_out), dtype, -bound, bound)
        b = jax.random.uniform(kb, (fan_out,), dtype, -bound, bound)
        params.append((w, b))
    return params


def pack_params(params):
    """Pad/cast the 8 (w, b) pairs ONCE into 5 packed kernel operands.

    Zero padding is exact: padded weight rows/cols and bias lanes are 0, so
    padded lanes remain 0 through every bias+ReLU layer."""
    f32 = jnp.float32
    (w1, _), (w8, b8) = params[0], params[-1]
    first_size = w1.shape[0]

    # First layer: (F, 90) -> (F, 128) bf16.
    w_first = (jnp.zeros((first_size, _LANE), f32)
               .at[:, :w1.shape[1]].set(w1.astype(f32)).astype(jnp.bfloat16))

    # Middle layers 2..7: each zero-padded to (128, 128), stacked -> (6,128,128).
    mids = []
    for w, _ in params[1:-1]:
        fi, fo = w.shape
        mids.append(jnp.zeros((_LANE, _LANE), f32).at[:fi, :fo].set(w.astype(f32)))
    w_mid = jnp.stack(mids).astype(jnp.bfloat16)

    # Last layer: (90, F) -> (128, F) bf16.
    w_last = (jnp.zeros((_LANE, first_size), f32)
              .at[:w8.shape[0], :].set(w8.astype(f32)).astype(jnp.bfloat16))

    # Biases 1..7 zero-padded to (1, 128), stacked -> (7, 1, 128) f32.
    bs = []
    for _, b in params[:-1]:
        bs.append(jnp.zeros((1, _LANE), f32).at[0, :b.shape[0]].set(b.astype(f32)))
    b_main = jnp.stack(bs)

    # Bias 8 kept at logical width F.
    b_last = b8.astype(f32).reshape(1, first_size)

    return w_first, w_mid, w_last, b_main, b_last


# ----------------------------------------------------------------------------
# Forward wrapper
# ----------------------------------------------------------------------------
def _choose_tile(batch):
    if batch >= _DEFAULT_TB:
        return _DEFAULT_TB
    return max(8, 8 * ((batch + 7) // 8))   # one tile covering the whole batch


def _forward_impl(x, packed, *, tile_batch=None, out_dtype=jnp.bfloat16):
    """x: [batch, first_size] float -> [batch, first_size] out_dtype."""
    w_first, w_mid, w_last, b_main, b_last = packed
    batch, first_size = x.shape
    tb = tile_batch if tile_batch is not None else _choose_tile(batch)
    num_tiles = pl.cdiv(batch, tb)

    # Activations walk the batch grid; params are pinned to block 0 every step
    # (constant index map -> DMA'd once, VMEM-resident).
    in_specs = [
        pl.BlockSpec((tb, first_size), lambda i: (i, 0)),           # x
        pl.BlockSpec(w_first.shape, lambda i: (0, 0)),              # w_first
        pl.BlockSpec(w_mid.shape, lambda i: (0, 0, 0)),             # w_mid
        pl.BlockSpec(w_last.shape, lambda i: (0, 0)),               # w_last
        pl.BlockSpec(b_main.shape, lambda i: (0, 0, 0)),            # b_main
        pl.BlockSpec(b_last.shape, lambda i: (0, 0)),               # b_last
    ]
    out_specs = pl.BlockSpec((tb, first_size), lambda i: (i, 0))

    param_bytes = sum(int(p.size) * p.dtype.itemsize for p in packed)
    cost = pl.CostEstimate(
        flops=2 * batch * (2 * first_size * _LANE + 6 * _LANE * _LANE),
        transcendentals=0,
        bytes_accessed=batch * first_size
        * (x.dtype.itemsize + jnp.dtype(out_dtype).itemsize) + param_bytes,
    )

    return pl.pallas_call(
        _autoencoder_kernel,
        out_shape=jax.ShapeDtypeStruct((batch, first_size), out_dtype),
        grid_spec=pl.GridSpec(
            grid=(num_tiles,),
            in_specs=in_specs,
            out_specs=out_specs,
        ),
        compiler_params=pltpu.CompilerParams(
            dimension_semantics=("parallel",)),
        cost_estimate=cost,
    )(x, w_first, w_mid, w_last, b_main, b_last)


# jit the whole wrapper so the pallas_call dispatch is the only work per call.
autoencoder_forward = jax.jit(
    _forward_impl, static_argnames=("tile_batch", "out_dtype"))


# ----------------------------------------------------------------------------
# Reference (identical bf16-matmul / f32-accumulate semantics as the kernel)
# ----------------------------------------------------------------------------
def _reference_forward(x, params):
    h = x.astype(jnp.bfloat16)
    for w, b in params:
        acc = jnp.dot(h, w.astype(jnp.bfloat16),
                      preferred_element_type=jnp.float32)
        h = jnp.maximum(acc + b.astype(jnp.float32), 0.0).astype(jnp.bfloat16)
    return h


# ----------------------------------------------------------------------------
# Self-test
# ----------------------------------------------------------------------------
if __name__ == "__main__":
    key = jax.random.PRNGKey(0)
    k_x, k_x2, k_p = jax.random.split(key, 3)

    first_size = 64
    params = make_params(first_size, k_p)
    packed = pack_params(params)          # padded/cast once, outside forward

    # Small batch: single grid step.
    x_small = jax.random.normal(k_x, (16, first_size), jnp.float32)
    out_small = jax.block_until_ready(autoencoder_forward(x_small, packed))
    ref_small = _reference_forward(x_small, params)
    assert out_small.shape == (16, first_size)
    assert out_small.dtype == jnp.bfloat16
    assert jnp.allclose(out_small.astype(jnp.float32),
                        ref_small.astype(jnp.float32),
                        atol=1e-2, rtol=1e-2), \
        "mismatch vs reference (small batch)"

    # Larger batch with a multi-step grid AND a partial last tile
    # (1000 = 3*256 + 232) to exercise the ragged-edge path.
    x_large = jax.random.normal(k_x2, (1000, first_size), jnp.float32)
    out_large = jax.block_until_ready(
        autoencoder_forward(x_large, packed, tile_batch=256))
    ref_large = _reference_forward(x_large, params)
    assert out_large.shape == (1000, first_size)
    assert jnp.allclose(out_large.astype(jnp.float32),
                        ref_large.astype(jnp.float32),
                        atol=1e-2, rtol=1e-2), \
        "mismatch vs reference (large batch, partial tile)"

    print("KERNEL_OK")
</pallas_src>

<mosaic_0001>
module attributes {stable_mosaic.version = 11 : i64} {
  func.func @_autoencoder_kernel(%arg0: i32, %arg1: memref<16x64xf32, #tpu.memory_space<vmem>>, %arg2: memref<64x128xbf16, #tpu.memory_space<vmem>>, %arg3: memref<6x128x128xbf16, #tpu.memory_space<vmem>>, %arg4: memref<128x64xbf16, #tpu.memory_space<vmem>>, %arg5: memref<7x1x128xf32, #tpu.memory_space<vmem>>, %arg6: memref<1x64xf32, #tpu.memory_space<vmem>>, %arg7: memref<16x64xbf16, #tpu.memory_space<vmem>>) attributes {dimension_semantics = [#tpu.dimension_semantics<parallel>], iteration_bounds = array<i64: 1>, scalar_prefetch = 0 : i64, scratch_operands = 0 : i64, tpu.core_type = #tpu.core_type<tc>, window_params = [{transform_indices = @transform_0, window_bounds = array<i64: 16, 64>}, {pipeline_mode = #tpu.pipeline_mode<synchronous>, transform_indices = @transform_1, window_bounds = array<i64: 64, 128>}, {pipeline_mode = #tpu.pipeline_mode<synchronous>, transform_indices = @transform_2, window_bounds = array<i64: 6, 128, 128>}, {pipeline_mode = #tpu.pipeline_mode<synchronous>, transform_indices = @transform_3, window_bounds = array<i64: 128, 64>}, {pipeline_mode = #tpu.pipeline_mode<synchronous>, transform_indices = @transform_4, window_bounds = array<i64: 7, 1, 128>}, {pipeline_mode = #tpu.pipeline_mode<synchronous>, transform_indices = @transform_5, window_bounds = array<i64: 1, 64>}, {transform_indices = @transform_6, window_bounds = array<i64: 16, 64>}]} {
    %c0 = arith.constant 0 : index
    %c0_0 = arith.constant 0 : index
    %0 = vector.load %arg1[%c0, %c0_0] : memref<16x64xf32, #tpu.memory_space<vmem>>, vector<16x64xf32>
    %1 = arith.truncf %0 : vector<16x64xf32> to vector<16x64xbf16>
    %c0_1 = arith.constant 0 : index
    %c0_2 = arith.constant 0 : index
    %2 = vector.load %arg2[%c0_1, %c0_2] : memref<64x128xbf16, #tpu.memory_space<vmem>>, vector<64x128xbf16>
    %cst = arith.constant dense<0.000000e+00> : vector<16x128xf32>
    %3 = tpu.matmul %1, %2, %cst {dimension_numbers = #tpu.dot_dimension_numbers<[1], [0], [0], [1], [0, 0, 1, 1], [], []>} : vector<16x64xbf16>, vector<64x128xbf16>, vector<16x128xf32> -> vector<16x128xf32>
    %c0_3 = arith.constant 0 : index
    %c0_4 = arith.constant 0 : index
    %c0_5 = arith.constant 0 : index
    %4 = vector.load %arg5[%c0_3, %c0_4, %c0_5] : memref<7x1x128xf32, #tpu.memory_space<vmem>>, vector<1x1x128xf32>
    %5 = vector.shape_cast %4 : vector<1x1x128xf32> to vector<1x128xf32>
    %6 = vector.broadcast %5 : vector<1x128xf32> to vector<16x128xf32>
    %7 = arith.addf %3, %6 : vector<16x128xf32>
    %cst_6 = arith.constant 0.000000e+00 : f32
    %8 = vector.broadcast %cst_6 : f32 to vector<16x128xf32>
    %9 = arith.maximumf %7, %8 : vector<16x128xf32>
    %10 = arith.truncf %9 : vector<16x128xf32> to vector<16x128xbf16>
    %c0_7 = arith.constant 0 : index
    %c0_8 = arith.constant 0 : index
    %c0_9 = arith.constant 0 : index
    %11 = vector.load %arg3[%c0_7, %c0_8, %c0_9] : memref<6x128x128xbf16, #tpu.memory_space<vmem>>, vector<1x128x128xbf16>
    %12 = vector.shape_cast %11 : vector<1x128x128xbf16> to vector<128x128xbf16>
    %cst_10 = arith.constant dense<0.000000e+00> : vector<16x128xf32>
    %13 = tpu.matmul %10, %12, %cst_10 {dimension_numbers = #tpu.dot_dimension_numbers<[1], [0], [0], [1], [0, 0, 1, 1], [], []>} : vector<16x128xbf16>, vector<128x128xbf16>, vector<16x128xf32> -> vector<16x128xf32>
    %c1 = arith.constant 1 : index
    %c0_11 = arith.constant 0 : index
    %c0_12 = arith.constant 0 : index
    %14 = vector.load %arg5[%c1, %c0_11, %c0_12] : memref<7x1x128xf32, #tpu.memory_space<vmem>>, vector<1x1x128xf32>
    %15 = vector.shape_cast %14 : vector<1x1x128xf32> to vector<1x128xf32>
    %16 = vector.broadcast %15 : vector<1x128xf32> to vector<16x128xf32>
    %17 = arith.addf %13, %16 : vector<16x128xf32>
    %cst_13 = arith.constant 0.000000e+00 : f32
    %18 = vector.broadcast %cst_13 : f32 to vector<16x128xf32>
    %19 = arith.maximumf %17, %18 : vector<16x128xf32>
    %20 = arith.truncf %19 : vector<16x128xf32> to vector<16x128xbf16>
    %c1_14 = arith.constant 1 : index
    %c0_15 = arith.constant 0 : index
    %c0_16 = arith.constant 0 : index
    %21 = vector.load %arg3[%c1_14, %c0_15, %c0_16] : memref<6x128x128xbf16, #tpu.memory_space<vmem>>, vector<1x128x128xbf16>
    %22 = vector.shape_cast %21 : vector<1x128x128xbf16> to vector<128x128xbf16>
    %cst_17 = arith.constant dense<0.000000e+00> : vector<16x128xf32>
    %23 = tpu.matmul %20, %22, %cst_17 {dimension_numbers = #tpu.dot_dimension_numbers<[1], [0], [0], [1], [0, 0, 1, 1], [], []>} : vector<16x128xbf16>, vector<128x128xbf16>, vector<16x128xf32> -> vector<16x128xf32>
    %c2 = arith.constant 2 : index
    %c0_18 = arith.constant 0 : index
    %c0_19 = arith.constant 0 : index
    %24 = vector.load %arg5[%c2, %c0_18, %c0_19] : memref<7x1x128xf32, #tpu.memory_space<vmem>>, vector<1x1x128xf32>
    %25 = vector.shape_cast %24 : vector<1x1x128xf32> to vector<1x128xf32>
    %26 = vector.broadcast %25 : vector<1x128xf32> to vector<16x128xf32>
    %27 = arith.addf %23, %26 : vector<16x128xf32>
    %cst_20 = arith.constant 0.000000e+00 : f32
    %28 = vector.broadcast %cst_20 : f32 to vector<16x128xf32>
    %29 = arith.maximumf %27, %28 : vector<16x128xf32>
    %30 = arith.truncf %29 : vector<16x128xf32> to vector<16x128xbf16>
    %c2_21 = arith.constant 2 : index
    %c0_22 = arith.constant 0 : index
    %c0_23 = arith.constant 0 : index
    %31 = vector.load %arg3[%c2_21, %c0_22, %c0_23] : memref<6x128x128xbf16, #tpu.memory_space<vmem>>, vector<1x128x128xbf16>
    %32 = vector.shape_cast %31 : vector<1x128x128xbf16> to vector<128x128xbf16>
    %cst_24 = arith.constant dense<0.000000e+00> : vector<16x128xf32>
    %33 = tpu.matmul %30, %32, %cst_24 {dimension_numbers = #tpu.dot_dimension_numbers<[1], [0], [0], [1], [0, 0, 1, 1], [], []>} : vector<16x128xbf16>, vector<128x128xbf16>, vector<16x128xf32> -> vector<16x128xf32>
    %c3 = arith.constant 3 : index
    %c0_25 = arith.constant 0 : index
    %c0_26 = arith.constant 0 : index
    %34 = vector.load %arg5[%c3, %c0_25, %c0_26] : memref<7x1x128xf32, #tpu.memory_space<vmem>>, vector<1x1x128xf32>
    %35 = vector.shape_cast %34 : vector<1x1x128xf32> to vector<1x128xf32>
    %36 = vector.broadcast %35 : vector<1x128xf32> to vector<16x128xf32>
    %37 = arith.addf %33, %36 : vector<16x128xf32>
    %cst_27 = arith.constant 0.000000e+00 : f32
    %38 = vector.broadcast %cst_27 : f32 to vector<16x128xf32>
    %39 = arith.maximumf %37, %38 : vector<16x128xf32>
    %40 = arith.truncf %39 : vector<16x128xf32> to vector<16x128xbf16>
    %c3_28 = arith.constant 3 : index
    %c0_29 = arith.constant 0 : index
    %c0_30 = arith.constant 0 : index
    %41 = vector.load %arg3[%c3_28, %c0_29, %c0_30] : memref<6x128x128xbf16, #tpu.memory_space<vmem>>, vector<1x128x128xbf16>
    %42 = vector.shape_cast %41 : vector<1x128x128xbf16> to vector<128x128xbf16>
    %cst_31 = arith.constant dense<0.000000e+00> : vector<16x128xf32>
    %43 = tpu.matmul %40, %42, %cst_31 {dimension_numbers = #tpu.dot_dimension_numbers<[1], [0], [0], [1], [0, 0, 1, 1], [], []>} : vector<16x128xbf16>, vector<128x128xbf16>, vector<16x128xf32> -> vector<16x128xf32>
    %c4 = arith.constant 4 : index
    %c0_32 = arith.constant 0 : index
    %c0_33 = arith.constant 0 : index
    %44 = vector.load %arg5[%c4, %c0_32, %c0_33] : memref<7x1x128xf32, #tpu.memory_space<vmem>>, vector<1x1x128xf32>
    %45 = vector.shape_cast %44 : vector<1x1x128xf32> to vector<1x128xf32>
    %46 = vector.broadcast %45 : vector<1x128xf32> to vector<16x128xf32>
    %47 = arith.addf %43, %46 : vector<16x128xf32>
    %cst_34 = arith.constant 0.000000e+00 : f32
    %48 = vector.broadcast %cst_34 : f32 to vector<16x128xf32>
    %49 = arith.maximumf %47, %48 : vector<16x128xf32>
    %50 = arith.truncf %49 : vector<16x128xf32> to vector<16x128xbf16>
    %c4_35 = arith.constant 4 : index
    %c0_36 = arith.constant 0 : index
    %c0_37 = arith.constant 0 : index
    %51 = vector.load %arg3[%c4_35, %c0_36, %c0_37] : memref<6x128x128xbf16, #tpu.memory_space<vmem>>, vector<1x128x128xbf16>
    %52 = vector.shape_cast %51 : vector<1x128x128xbf16> to vector<128x128xbf16>
    %cst_38 = arith.constant dense<0.000000e+00> : vector<16x128xf32>
    %53 = tpu.matmul %50, %52, %cst_38 {dimension_numbers = #tpu.dot_dimension_numbers<[1], [0], [0], [1], [0, 0, 1, 1], [], []>} : vector<16x128xbf16>, vector<128x128xbf16>, vector<16x128xf32> -> vector<16x128xf32>
    %c5 = arith.constant 5 : index
    %c0_39 = arith.constant 0 : index
    %c0_40 = arith.constant 0 : index
    %54 = vector.load %arg5[%c5, %c0_39, %c0_40] : memref<7x1x128xf32, #tpu.memory_space<vmem>>, vector<1x1x128xf32>
    %55 = vector.shape_cast %54 : vector<1x1x128xf32> to vector<1x128xf32>
    %56 = vector.broadcast %55 : vector<1x128xf32> to vector<16x128xf32>
    %57 = arith.addf %53, %56 : vector<16x128xf32>
    %cst_41 = arith.constant 0.000000e+00 : f32
    %58 = vector.broadcast %cst_41 : f32 to vector<16x128xf32>
    %59 = arith.maximumf %57, %58 : vector<16x128xf32>
    %60 = arith.truncf %59 : vector<16x128xf32> to vector<16x128xbf16>
    %c5_42 = arith.constant 5 : index
    %c0_43 = arith.constant 0 : index
    %c0_44 = arith.constant 0 : index
    %61 = vector.load %arg3[%c5_42, %c0_43, %c0_44] : memref<6x128x128xbf16, #tpu.memory_space<vmem>>, vector<1x128x128xbf16>
    %62 = vector.shape_cast %61 : vector<1x128x128xbf16> to vector<128x128xbf16>
    %cst_45 = arith.constant dense<0.000000e+00> : vector<16x128xf32>
    %63 = tpu.matmul %60, %62, %cst_45 {dimension_numbers = #tpu.dot_dimension_numbers<[1], [0], [0], [1], [0, 0, 1, 1], [], []>} : vector<16x128xbf16>, vector<128x128xbf16>, vector<16x128xf32> -> vector<16x128xf32>
    %c6 = arith.constant 6 : index
    %c0_46 = arith.constant 0 : index
    %c0_47 = arith.constant 0 : index
    %64 = vector.load %arg5[%c6, %c0_46, %c0_47] : memref<7x1x128xf32, #tpu.memory_space<vmem>>, vector<1x1x128xf32>
    %65 = vector.shape_cast %64 : vector<1x1x128xf32> to vector<1x128xf32>
    %66 = vector.broadcast %65 : vector<1x128xf32> to vector<16x128xf32>
    %67 = arith.addf %63, %66 : vector<16x128xf32>
    %cst_48 = arith.constant 0.000000e+00 : f32
    %68 = vector.broadcast %cst_48 : f32 to vector<16x128xf32>
    %69 = arith.maximumf %67, %68 : vector<16x128xf32>
    %70 = arith.truncf %69 : vector<16x128xf32> to vector<16x128xbf16>
    %c0_49 = arith.constant 0 : index
    %c0_50 = arith.constant 0 : index
    %71 = vector.load %arg4[%c0_49, %c0_50] : memref<128x64xbf16, #tpu.memory_space<vmem>>, vector<128x64xbf16>
    %cst_51 = arith.constant dense<0.000000e+00> : vector<16x64xf32>
    %72 = tpu.matmul %70, %71, %cst_51 {dimension_numbers = #tpu.dot_dimension_numbers<[1], [0], [0], [1], [0, 0, 1, 1], [], []>} : vector<16x128xbf16>, vector<128x64xbf16>, vector<16x64xf32> -> vector<16x64xf32>
    %c0_52 = arith.constant 0 : index
    %c0_53 = arith.constant 0 : index
    %73 = vector.load %arg6[%c0_52, %c0_53] : memref<1x64xf32, #tpu.memory_space<vmem>>, vector<1x64xf32>
    %74 = vector.broadcast %73 : vector<1x64xf32> to vector<16x64xf32>
    %75 = arith.addf %72, %74 : vector<16x64xf32>
    %cst_54 = arith.constant 0.000000e+00 : f32
    %76 = vector.broadcast %cst_54 : f32 to vector<16x64xf32>
    %77 = arith.maximumf %75, %76 : vector<16x64xf32>
    %78 = arith.truncf %77 : vector<16x64xf32> to vector<16x64xbf16>
    %c0_55 = arith.constant 0 : index
    %c0_56 = arith.constant 0 : index
    %79 = vector.load %arg7[%c0_55, %c0_56] : memref<16x64xbf16, #tpu.memory_space<vmem>>, vector<16x64xbf16>
    tpu.vector_store %arg7[%c0_55, %c0_56], %78 {strides = array<i32>} : memref<16x64xbf16, #tpu.memory_space<vmem>>, vector<16x64xbf16>,
    return
  }
  func.func @transform_0(%arg0: i32) -> (i32, i32) {
    %c0_i32 = arith.constant 0 : i32
    %c0_i32_0 = arith.constant 0 : i32
    return %arg0, %c0_i32 : i32, i32
  }
  func.func @transform_1(%arg0: i32) -> (i32, i32) {
    %c0_i32 = arith.constant 0 : i32
    %c0_i32_0 = arith.constant 0 : i32
    %c0_i32_1 = arith.constant 0 : i32
    return %c0_i32, %c0_i32_0 : i32, i32
  }
  func.func @transform_2(%arg0: i32) -> (i32, i32, i32) {
    %c0_i32 = arith.constant 0 : i32
    %c0_i32_0 = arith.constant 0 : i32
    %c0_i32_1 = arith.constant 0 : i32
    %c0_i32_2 = arith.constant 0 : i32
    return %c0_i32, %c0_i32_0, %c0_i32_1 : i32, i32, i32
  }
  func.func @transform_3(%arg0: i32) -> (i32, i32) {
    %c0_i32 = arith.constant 0 : i32
    %c0_i32_0 = arith.constant 0 : i32
    %c0_i32_1 = arith.constant 0 : i32
    return %c0_i32, %c0_i32_0 : i32, i32
  }
  func.func @transform_4(%arg0: i32) -> (i32, i32, i32) {
    %c0_i32 = arith.constant 0 : i32
    %c0_i32_0 = arith.constant 0 : i32
    %c0_i32_1 = arith.constant 0 : i32
    %c0_i32_2 = arith.constant 0 : i32
    return %c0_i32, %c0_i32_0, %c0_i32_1 : i32, i32, i32
  }
  func.func @transform_5(%arg0: i32) -> (i32, i32) {
    %c0_i32 = arith.constant 0 : i32
    %c0_i32_0 = arith.constant 0 : i32
    %c0_i32_1 = arith.constant 0 : i32
    return %c0_i32, %c0_i32_0 : i32, i32
  }
  func.func @transform_6(%arg0: i32) -> (i32, i32) {
    %c0_i32 = arith.constant 0 : i32
    %c0_i32_0 = arith.constant 0 : i32
    return %arg0, %c0_i32 : i32, i32
  }
}

</mosaic_0001>

<bundles_post_ra>
// kernel: _forward_impl.1
= control target key start
LH: loop header
LB: loop body
LE: loop exit
PB: predicated region body
PF: predicated region fallthrough
CT: control target
= control target key end

     0   :  { %11 = vsyncpa [#allocation3], 0  ;;  %s1576_s0 = inlined_call_operand.vmem [shape: f32[16,64], index: 0, kind: input, shape index: {}]   ;;  %s1577_s1 = inlined_call_operand.vmem [shape: bf16[64,128], index: 1, kind: input, shape index: {}]   ;;  %s1578_s2 = inlined_call_operand.hbm [shape: bf16[6,128,128], index: 2, kind: input, shape index: {}]   ;;  %s1579_s3 = inlined_call_operand.vmem [shape: bf16[128,64], index: 3, kind: input, shape index: {}]   ;;  %s1580_s4 = inlined_call_operand.vmem [shape: f32[7,1,128], index: 4, kind: input, shape index: {}]   ;;  %s1581_s5 = inlined_call_operand.vmem [shape: f32[1,64], index: 5, kind: input, shape index: {}]   ;;  %s1582_s6 = inlined_call_operand.hbm [shape: bf16[16,64], index: 6, kind: output, shape index: {}]  }
   0x1   :  { %12 = vsyncpa [#allocation4], 0  ;;  %s1381_s21 = smov [#allocation2]  }
   0x2   :  { %s22_s22 = sshll.u32 %s1381_s21, 4  ;;  %s23_s22 = int_to_ptr.vmem [resolvable:$true] %s22_s22 }
   0x3   :  { %s1345_s23 = scalar_lea.vmem %s23_s22, 6144  ;;  %p1350_p1 = scmp.lt.s32.totalorder %s23_s22, %s23_s22 }
   0x4   :  { %p1346_p0 = scmp.ne.s32.totalorder %s23_s22, %s1345_s23  ;;  %p1351_p2 = scmp.lt.s32.totalorder %s1345_s23, %s1345_s23 }
   0x6   :  { %p1352_p3 = por %p1351_p2, %p1350_p1 }
   0x8   :  { %p1353_p4 = pnand %p1352_p3, %p1346_p0 }
   0xa   :  { %1356 = shalt.err (!%p1353_p4)
}
   0xb   :  { %s1382_s24 = smov 64   ;;  %s1383_s25 = smov 4  }
   0xc   :  { %28 = dma.hbm_to_vmem [thread:$0]  %s1578_s2, 6144, %s23_s22, [#allocation3], %s1382_s24, %s1382_s24, %s1383_s25  }
   0xd   :  { %1377 = dma.done.wait [#allocation3], 6144  }
   0xe   :  { %1378 = vsyncadd [#allocation3], 4294961152  ;;  %v1384_v0 = vmov 0.0   ;;  %vm1385_vm0 = vmmov 0   ;;  %v1277_v1 = vld [vmem:[%s1577_s1 + $0x18] sm:$0xff]   ;;  %v1278_v2 = vld [vmem:[%s1577_s1 + $0x10] sm:$0xff]  }
   0xf   :  { %1119 = vmatprep.subr.bf16.mxu0 %v1384_v0  ;;  %1127 = vmatprep.mubr.msk.bf16.mxu0 %vm1385_vm0, %v1384_v0  ;;  %v1281_v3 = vld [vmem:[#allocation2 + $0x38] sm:$0xff]   ;;  %v1279_v4 = vld [vmem:[%s1577_s1 + $0x8] sm:$0xff]   ;;  %v1282_v5 = vld [vmem:[#allocation2 + $0x30] sm:$0xff]   ;;  %vm81_vm1 = vcmask 523264   ;;  %vm952_vm2 = vcmask 519168  }
  0x10   :  { %1131 = vmatprep.subr.bf16.mxu1 %v1384_v0  ;;  %1147 = vmatprep.mubr.msk.bf16.mxu1 %vm1385_vm0, %v1384_v0  ;;  %v1280_v6 = vld [vmem:[%s1577_s1] sm:$0xff]   ;;  %v40_v8 = vld [vmem:[%s1576_s0 + $0x8] sm:$0xff]  ;;  %v1285_v12 = vld [vmem:[#allocation2 + $0x18] sm:$0xff]  }
  0x11   :  { %1120 = vmatpush3.bf16.msra.mxu0 %v1277_v1  ;;  %1132 = vmatpush3.bf16.msra.mxu1 %v1281_v3  ;;  %v39_v7 = vld [vmem:[%s1576_s0] sm:$0xff]  ;;  %v1283_v9 = vld [vmem:[#allocation2 + $0x28] sm:$0xff]   ;;  %v1286_v13 = vld [vmem:[#allocation2 + $0x10] sm:$0xff]  }
  0x12   :  { %1121 = vmatprep.subr.bf16.mxu0 %v1384_v0  ;;  %1133 = vmatprep.subr.bf16.mxu1 %v1384_v0  ;;  %v41_v10 = vpack.c.bf16 %v40_v8, %v39_v7  ;;  %v1284_v11 = vld [vmem:[#allocation2 + $0x20] sm:$0xff]   ;;  %v1287_v14 = vld [vmem:[#allocation2 + $0x8] sm:$0xff]   ;;  %v1289_v16 = vld [vmem:[#allocation2 + $0x78] sm:$0xff]  }
  0x13   :  { %v1288_v15 = vld [vmem:[#allocation2] sm:$0xff]   ;;  %v1290_v17 = vld [vmem:[#allocation2 + $0x70] sm:$0xff]   ;;  %v1291_v18 = vld [vmem:[#allocation2 + $0x68] sm:$0xff]  }
  0x14   :  { %v1292_v19 = vld [vmem:[#allocation2 + $0x60] sm:$0xff]   ;;  %v1293_v20 = vld [vmem:[#allocation2 + $0x58] sm:$0xff]   ;;  %v1294_v31 = vld [vmem:[#allocation2 + $0x50] sm:$0xff]  }
  0x15   :  { %1122 = vmatpush3.bf16.msra.mxu0 %v1278_v2  ;;  %1134 = vmatpush3.bf16.msra.mxu1 %v1282_v5  ;;  %v972_v21 = vld [vmem:[%s1580_s4] ss:$0 sm:$0xff]  ;;  %v1295_v32 = vld [vmem:[#allocation2 + $0x48] sm:$0xff]   ;;  %v1297_v34 = vld [vmem:[#allocation2 + $0xb8] sm:$0xff]  }
  0x16   :  { %1123 = vmatprep.subr.bf16.mxu0 %v1384_v0  ;;  %1135 = vmatprep.subr.bf16.mxu1 %v1384_v0  ;;  %v1296_v33 = vld [vmem:[#allocation2 + $0x40] sm:$0xff]   ;;  %v1298_v35 = vld [vmem:[#allocation2 + $0xb0] sm:$0xff]   ;;  %v1299_v36 = vld [vmem:[#allocation2 + $0xa8] sm:$0xff]  }
  0x17   :  { %v1300_v37 = vld [vmem:[#allocation2 + $0xa0] sm:$0xff]   ;;  %v1301_v38 = vld [vmem:[#allocation2 + $0x98] sm:$0xff]   ;;  %v1302_v49 = vld [vmem:[#allocation2 + $0x90] sm:$0xff]  }
  0x18   :  { %v979_v39 = vld [vmem:[%s1580_s4 + $0x1] ss:$0 sm:$0xff]  ;;  %v1303_v50 = vld [vmem:[#allocation2 + $0x88] sm:$0xff]   ;;  %v1305_v52 = vld [vmem:[#allocation2 + $0xf8] sm:$0xff]  }
  0x19   :  { %1124 = vmatpush3.bf16.msra.mxu0 %v1279_v4  ;;  %1136 = vmatpush3.bf16.msra.mxu1 %v1283_v9  ;;  %v1304_v51 = vld [vmem:[#allocation2 + $0x80] sm:$0xff]   ;;  %v1306_v53 = vld [vmem:[#allocation2 + $0xf0] sm:$0xff]   ;;  %v1307_v54 = vld [vmem:[#allocation2 + $0xe8] sm:$0xff]  }
  0x1a   :  { %1125 = vmatprep.subr.bf16.mxu0 %v1384_v0  ;;  %1137 = vmatprep.subr.bf16.mxu1 %v1384_v0  ;;  %v1308_v55 = vld [vmem:[#allocation2 + $0xe0] sm:$0xff]   ;;  %v1309_v56 = vld [vmem:[#allocation2 + $0xd8] sm:$0xff]   ;;  %v1310_v4 = vld [vmem:[#allocation2 + $0xd0] sm:$0xff]  }
  0x1b   :  { %v989_v57 = vld [vmem:[%s1580_s4 + $0x2] ss:$0 sm:$0xff]  ;;  %v1311_v5 = vld [vmem:[#allocation2 + $0xc8] sm:$0xff]   ;;  %v1313_v7 = vld [vmem:[#allocation2 + $0x138] sm:$0xff]  }
  0x1c   :  { %v1314_v8 = vld [vmem:[#allocation2 + $0x130] sm:$0xff]   ;;  %v1315_v9 = vld [vmem:[#allocation2 + $0x128] sm:$0xff]  }
  0x1d   :  { %1126 = vmatpush3.bf16.msra.mxu0 %v1280_v6  ;;  %1138 = vmatpush3.bf16.msra.mxu1 %v1284_v11  ;;  %v1312_v6 = vld [vmem:[#allocation2 + $0xc0] sm:$0xff]   ;;  %v1317_v11 = vld [vmem:[#allocation2 + $0x118] sm:$0xff]  }
  0x1e   :  { %1151 = vmatprep.subr.bf16.mxu0 %v1384_v0  ;;  %1139 = vmatprep.subr.bf16.mxu1 %v1384_v0 }
  0x20   :  { %1128 = vmatmul.mubr.msk.bf16.vlgmr.msra.gmra.mxu0 %vm81_vm1, %v41_v10  ;;  %v1316_v10 = vld [vmem:[#allocation2 + $0x120] sm:$0xff]  }
  0x21   :  { %1167 = vmatprep.mubr.msk.bf16.mxu0 %vm1385_vm0, %v1384_v0  ;;  %1140 = vmatpush3.bf16.msra.mxu1 %v1285_v12  ;;  %v999_v12 = vld [vmem:[%s1580_s4 + $0x3] ss:$0 sm:$0xff] }
  0x22   :  { %1141 = vmatprep.subr.bf16.mxu1 %v1384_v0  ;;  %1152 = vmatpush3.bf16.msra.mxu0 %v1289_v16 }
  0x23   :  { %1153 = vmatprep.subr.bf16.mxu0 %v1384_v0 }
  0x25   :  { %1142 = vmatpush3.bf16.msra.mxu1 %v1286_v13 }
  0x26   :  { %1143 = vmatprep.subr.bf16.mxu1 %v1384_v0  ;;  %1154 = vmatpush3.bf16.msra.mxu0 %v1290_v17 }
  0x27   :  { %1155 = vmatprep.subr.bf16.mxu0 %v1384_v0 }
  0x29   :  { %1144 = vmatpush3.bf16.msra.mxu1 %v1287_v14 }
  0x2a   :  { %1145 = vmatprep.subr.bf16.mxu1 %v1384_v0  ;;  %1156 = vmatpush3.bf16.msra.mxu0 %v1291_v18 }
  0x2b   :  { %1157 = vmatprep.subr.bf16.mxu0 %v1384_v0 }
  0x2d   :  { %1146 = vmatpush3.bf16.msra.mxu1 %v1288_v15 }
  0x2e   :  { %1171 = vmatprep.subr.bf16.mxu1 %v1384_v0  ;;  %1158 = vmatpush3.bf16.msra.mxu0 %v1292_v19 }
  0x2f   :  { %1159 = vmatprep.subr.bf16.mxu0 %v1384_v0 }
  0x32   :  { %1160 = vmatpush3.bf16.msra.mxu0 %v1293_v20 }
  0x33   :  { %1161 = vmatprep.subr.bf16.mxu0 %v1384_v0 }
  0x36   :  { %1162 = vmatpush3.bf16.msra.mxu0 %v1294_v31 }
  0x37   :  { %1163 = vmatprep.subr.bf16.mxu0 %v1384_v0 }
  0x3a   :  { %1164 = vmatpush3.bf16.msra.mxu0 %v1295_v32 }
  0x3b   :  { %1165 = vmatprep.subr.bf16.mxu0 %v1384_v0 }
  0x3e   :  { %1166 = vmatpush3.bf16.msra.mxu0 %v1296_v33 }
  0x3f   :  { %1191 = vmatprep.subr.bf16.mxu0 %v1384_v0 }
  0xe0   :  { %v119_v22 = vpop.f32.mrf.mxu0 }
  0xe1   :  { %v120_v24 = vadd.f32 %v972_v21, %v119_v22  ;;  %v1318_v22 = vld [vmem:[#allocation2 + $0x110] sm:$0xff]  }
  0xe2   :  { %v1129_v23 = vpop.f32.mrf.mxu0 }
  0xe3   :  { %v126_v28 = vmax.f32 %v120_v24, 0.0  ;;  %v1319_v23 = vld [vmem:[#allocation2 + $0x108] sm:$0xff]   ;;  %v1320_v24 = vld [vmem:[#allocation2 + $0x100] sm:$0xff]  }
  0xe4   :  { %v122_v25 = vpop.f32.mrf.mxu0 }
  0xe5   :  { %v123_v26 = vadd.f32 %v972_v21, %v122_v25  ;;  %v1321_v25 = vld [vmem:[#allocation2 + $0x178] sm:$0xff]  }
  0xe6   :  { %v1130_v27 = vpop.f32.mrf.mxu0 }
  0xe7   :  { %v127_v29 = vmax.f32 %v123_v26, 0.0  ;;  %v1322_v26 = vld [vmem:[#allocation2 + $0x170] sm:$0xff]   ;;  %v1323_v27 = vld [vmem:[#allocation2 + $0x168] sm:$0xff]  }
  0xe9   :  { %v128_v30 = vpack.c.bf16 %v127_v29, %v126_v28  ;;  %v1324_v28 = vld [vmem:[#allocation2 + $0x160] sm:$0xff]   ;;  %v1325_v29 = vld [vmem:[#allocation2 + $0x158] sm:$0xff]  }
  0xeb   :  { %1148 = vmatmul.mubr.bf16.vlgmr.msra.gmra.mxu1 %v128_v30  ;;  %v1009_v30 = vld [vmem:[%s1580_s4 + $0x4] ss:$0 sm:$0xff] }
  0xec   :  { %1187 = vmatprep.mubr.msk.bf16.mxu1 %vm1385_vm0, %v1384_v0  ;;  %1172 = vmatpush3.bf16.msra.mxu1 %v1297_v34 }
  0xed   :  { %1173 = vmatprep.subr.bf16.mxu1 %v1384_v0 }
  0xf0   :  { %1174 = vmatpush3.bf16.msra.mxu1 %v1298_v35 }
  0xf1   :  { %1175 = vmatprep.subr.bf16.mxu1 %v1384_v0 }
  0xf4   :  { %1176 = vmatpush3.bf16.msra.mxu1 %v1299_v36 }
  0xf5   :  { %1177 = vmatprep.subr.bf16.mxu1 %v1384_v0 }
  0xf8   :  { %1178 = vmatpush3.bf16.msra.mxu1 %v1300_v37 }
  0xf9   :  { %1179 = vmatprep.subr.bf16.mxu1 %v1384_v0 }
  0xfc   :  { %1180 = vmatpush3.bf16.msra.mxu1 %v1301_v38 }
  0xfd   :  { %1181 = vmatprep.subr.bf16.mxu1 %v1384_v0 }
 0x100   :  { %1182 = vmatpush3.bf16.msra.mxu1 %v1302_v49 }
 0x101   :  { %1183 = vmatprep.subr.bf16.mxu1 %v1384_v0 }
 0x104   :  { %1184 = vmatpush3.bf16.msra.mxu1 %v1303_v50 }
 0x105   :  { %1185 = vmatprep.subr.bf16.mxu1 %v1384_v0 }
 0x108   :  { %1186 = vmatpush3.bf16.msra.mxu1 %v1304_v51 }
 0x109   :  { %1211 = vmatprep.subr.bf16.mxu1 %v1384_v0 }
 0x1ab   :  { %v235_v40 = vpop.f32.mrf.mxu1 }
 0x1ac   :  { %v236_v42 = vadd.f32 %v979_v39, %v235_v40  ;;  %v1326_v40 = vld [vmem:[#allocation2 + $0x150] sm:$0xff]  }
 0x1ad   :  { %v1149_v41 = vpop.f32.mrf.mxu1 }
 0x1ae   :  { %v242_v46 = vmax.f32 %v236_v42, 0.0  ;;  %v1327_v41 = vld [vmem:[#allocation2 + $0x148] sm:$0xff]   ;;  %v1328_v42 = vld [vmem:[#allocation2 + $0x140] sm:$0xff]  }
 0x1af   :  { %v238_v43 = vpop.f32.mrf.mxu1 }
 0x1b0   :  { %v239_v44 = vadd.f32 %v979_v39, %v238_v43  ;;  %v1329_v43 = vld [vmem:[%s1579_s3 + $0x38] sm:$0xff]  }
 0x1b1   :  { %v1150_v45 = vpop.f32.mrf.mxu1 }
 0x1b2   :  { %v243_v47 = vmax.f32 %v239_v44, 0.0  ;;  %v1330_v44 = vld [vmem:[%s1579_s3 + $0x30] sm:$0xff]   ;;  %v1331_v45 = vld [vmem:[%s1579_s3 + $0x28] sm:$0xff]  }
 0x1b4   :  { %v244_v48 = vpack.c.bf16 %v243_v47, %v242_v46  ;;  %v1332_v46 = vld [vmem:[%s1579_s3 + $0x20] sm:$0xff]   ;;  %v1333_v47 = vld [vmem:[%s1579_s3 + $0x18] sm:$0xff]  }
 0x1b6   :  { %1168 = vmatmul.mubr.bf16.vlgmr.msra.gmra.mxu0 %v244_v48  ;;  %v1019_v48 = vld [vmem:[%s1580_s4 + $0x5] ss:$0 sm:$0xff] }
 0x1b7   :  { %1207 = vmatprep.mubr.msk.bf16.mxu0 %vm1385_vm0, %v1384_v0  ;;  %1192 = vmatpush3.bf16.msra.mxu0 %v1305_v52 }
 0x1b8   :  { %1193 = vmatprep.subr.bf16.mxu0 %v1384_v0 }
 0x1bb   :  { %1194 = vmatpush3.bf16.msra.mxu0 %v1306_v53 }
 0x1bc   :  { %1195 = vmatprep.subr.bf16.mxu0 %v1384_v0 }
 0x1bf   :  { %1196 = vmatpush3.bf16.msra.mxu0 %v1307_v54 }
 0x1c0   :  { %1197 = vmatprep.subr.bf16.mxu0 %v1384_v0 }
 0x1c3   :  { %1198 = vmatpush3.bf16.msra.mxu0 %v1308_v55 }
 0x1c4   :  { %1199 = vmatprep.subr.bf16.mxu0 %v1384_v0 }
 0x1c7   :  { %1200 = vmatpush3.bf16.msra.mxu0 %v1309_v56 }
 0x1c8   :  { %1201 = vmatprep.subr.bf16.mxu0 %v1384_v0 }
 0x1cb   :  { %1202 = vmatpush3.bf16.msra.mxu0 %v1310_v4 }
 0x1cc   :  { %1203 = vmatprep.subr.bf16.mxu0 %v1384_v0 }
 0x1cf   :  { %1204 = vmatpush3.bf16.msra.mxu0 %v1311_v5 }
 0x1d0   :  { %1205 = vmatprep.subr.bf16.mxu0 %v1384_v0 }
 0x1d3   :  { %1206 = vmatpush3.bf16.msra.mxu0 %v1312_v6 }
 0x1d4   :  { %1231 = vmatprep.subr.bf16.mxu0 %v1384_v0 }
 0x276   :  { %v352_v58 = vpop.f32.mrf.mxu0 }
 0x277   :  { %v353_v60 = vadd.f32 %v989_v57, %v352_v58  ;;  %v1334_v58 = vld [vmem:[%s1579_s3 + $0x10] sm:$0xff]  }
 0x278   :  { %v1169_v59 = vpop.f32.mrf.mxu0 }
 0x279   :  { %v359_v1 = vmax.f32 %v353_v60, 0.0  ;;  %v1335_v59 = vld [vmem:[%s1579_s3 + $0x8] sm:$0xff]   ;;  %v1336_v60 = vld [vmem:[%s1579_s3] sm:$0xff]   ;;  %s1386_s3 = smov [#allocation5]  }
 0x27a   :  { %v355_v61 = vpop.f32.mrf.mxu0 }
 0x27b   :  { %v356_v62 = vadd.f32 %v989_v57, %v355_v61  ;;  %v1029_v61 = vld [vmem:[%s1580_s4 + $0x6] ss:$0 sm:$0xff]  ;;  %s960_s4 = sshll.u32 %s1386_s3, 4  ;;  %s961_s4 = int_to_ptr.vmem [resolvable:$true] %s960_s4 }
 0x27c   :  { %v1170_v63 = vpop.f32.mrf.mxu0  ;;  %s1357_s20 = scalar_lea.vmem %s961_s4, 128  ;;  %p1362_p6 = scmp.lt.s32.totalorder %s961_s4, %s961_s4 }
 0x27d   :  { %v360_v2 = vmax.f32 %v356_v62, 0.0  ;;  %p1358_p5 = scmp.ne.s32.totalorder %s961_s4, %s1357_s20  ;;  %p1363_p7 = scmp.lt.s32.totalorder %s1357_s20, %s1357_s20 }
 0x27f   :  { %v361_v3 = vpack.c.bf16 %v360_v2, %v359_v1  ;;  %p1364_p8 = por %p1363_p7, %p1362_p6 }
 0x281   :  { %1188 = vmatmul.mubr.bf16.vlgmr.msra.gmra.mxu1 %v361_v3  ;;  %p1365_p9 = pnand %p1364_p8, %p1358_p5 }
 0x282   :  { %1227 = vmatprep.mubr.msk.bf16.mxu1 %vm1385_vm0, %v1384_v0  ;;  %1212 = vmatpush3.bf16.msra.mxu1 %v1313_v7 }
 0x283   :  { %1213 = vmatprep.subr.bf16.mxu1 %v1384_v0 }
 0x286   :  { %1214 = vmatpush3.bf16.msra.mxu1 %v1314_v8 }
 0x287   :  { %1215 = vmatprep.subr.bf16.mxu1 %v1384_v0 }
 0x28a   :  { %1216 = vmatpush3.bf16.msra.mxu1 %v1315_v9 }
 0x28b   :  { %1217 = vmatprep.subr.bf16.mxu1 %v1384_v0 }
 0x28e   :  { %1218 = vmatpush3.bf16.msra.mxu1 %v1316_v10 }
 0x28f   :  { %1219 = vmatprep.subr.bf16.mxu1 %v1384_v0 }
 0x292   :  { %1220 = vmatpush3.bf16.msra.mxu1 %v1317_v11 }
 0x293   :  { %1221 = vmatprep.subr.bf16.mxu1 %v1384_v0 }
 0x296   :  { %1222 = vmatpush3.bf16.msra.mxu1 %v1318_v22 }
 0x297   :  { %1223 = vmatprep.subr.bf16.mxu1 %v1384_v0 }
 0x29a   :  { %1224 = vmatpush3.bf16.msra.mxu1 %v1319_v23 }
 0x29b   :  { %1225 = vmatprep.subr.bf16.mxu1 %v1384_v0 }
 0x29e   :  { %1226 = vmatpush3.bf16.msra.mxu1 %v1320_v24 }
 0x29f   :  { %1251 = vmatprep.subr.bf16.mxu1 %v1384_v0 }
 0x341   :  { %v469_v13 = vpop.f32.mrf.mxu1 }
 0x342   :  { %v470_v15 = vadd.f32 %v999_v12, %v469_v13 }
 0x343   :  { %v1189_v14 = vpop.f32.mrf.mxu1 }
 0x344   :  { %v476_v19 = vmax.f32 %v470_v15, 0.0 }
 0x345   :  { %v472_v16 = vpop.f32.mrf.mxu1 }
 0x346   :  { %v473_v17 = vadd.f32 %v999_v12, %v472_v16 }
 0x347   :  { %v1190_v18 = vpop.f32.mrf.mxu1 }
 0x348   :  { %v477_v20 = vmax.f32 %v473_v17, 0.0 }
 0x34a   :  { %v478_v21 = vpack.c.bf16 %v477_v20, %v476_v19 }
 0x34c   :  { %1208 = vmatmul.mubr.bf16.vlgmr.msra.gmra.mxu0 %v478_v21 }
 0x34d   :  { %1247 = vmatprep.mubr.msk.bf16.mxu0 %vm1385_vm0, %v1384_v0  ;;  %1232 = vmatpush3.bf16.msra.mxu0 %v1321_v25 }
 0x34e   :  { %1233 = vmatprep.subr.bf16.mxu0 %v1384_v0 }
 0x351   :  { %1234 = vmatpush3.bf16.msra.mxu0 %v1322_v26 }
 0x352   :  { %1235 = vmatprep.subr.bf16.mxu0 %v1384_v0 }
 0x355   :  { %1236 = vmatpush3.bf16.msra.mxu0 %v1323_v27 }
 0x356   :  { %1237 = vmatprep.subr.bf16.mxu0 %v1384_v0 }
 0x359   :  { %1238 = vmatpush3.bf16.msra.mxu0 %v1324_v28 }
 0x35a   :  { %1239 = vmatprep.subr.bf16.mxu0 %v1384_v0 }
 0x35d   :  { %1240 = vmatpush3.bf16.msra.mxu0 %v1325_v29 }
 0x35e   :  { %1241 = vmatprep.subr.bf16.mxu0 %v1384_v0 }
 0x361   :  { %1242 = vmatpush3.bf16.msra.mxu0 %v1326_v40 }
 0x362   :  { %1243 = vmatprep.subr.bf16.mxu0 %v1384_v0 }
 0x365   :  { %1244 = vmatpush3.bf16.msra.mxu0 %v1327_v41 }
 0x366   :  { %1245 = vmatprep.subr.bf16.mxu0 %v1384_v0 }
 0x369   :  { %1246 = vmatpush3.bf16.msra.mxu0 %v1328_v42 }
 0x40c   :  { %v586_v31 = vpop.f32.mrf.mxu0 }
 0x40d   :  { %v587_v33 = vadd.f32 %v1009_v30, %v586_v31 }
 0x40e   :  { %v1209_v32 = vpop.f32.mrf.mxu0 }
 0x40f   :  { %v593_v37 = vmax.f32 %v587_v33, 0.0 }
 0x410   :  { %v589_v34 = vpop.f32.mrf.mxu0 }
 0x411   :  { %v590_v35 = vadd.f32 %v1009_v30, %v589_v34 }
 0x412   :  { %v1210_v36 = vpop.f32.mrf.mxu0 }
 0x413   :  { %v594_v38 = vmax.f32 %v590_v35, 0.0 }
 0x415   :  { %v595_v39 = vpack.c.bf16 %v594_v38, %v593_v37 }
 0x417   :  { %1228 = vmatmul.mubr.bf16.vlgmr.msra.gmra.mxu1 %v595_v39 }
 0x418   :  { %1267 = vmatprep.mubr.msk.bf16.mxu1 %vm1385_vm0, %v1384_v0  ;;  %1252 = vmatpush3.bf16.msra.mxu1 %v1329_v43 }
 0x419   :  { %1253 = vmatprep.subr.bf16.mxu1 %v1384_v0 }
 0x41c   :  { %1254 = vmatpush3.bf16.msra.mxu1 %v1330_v44 }
 0x41d   :  { %1255 = vmatprep.subr.bf16.mxu1 %v1384_v0 }
 0x420   :  { %1256 = vmatpush3.bf16.msra.mxu1 %v1331_v45 }
 0x421   :  { %1257 = vmatprep.subr.bf16.mxu1 %v1384_v0 }
 0x424   :  { %1258 = vmatpush3.bf16.msra.mxu1 %v1332_v46 }
 0x425   :  { %1259 = vmatprep.subr.bf16.mxu1 %v1384_v0 }
 0x428   :  { %1260 = vmatpush3.bf16.msra.mxu1 %v1333_v47 }
 0x429   :  { %1261 = vmatprep.subr.bf16.mxu1 %v1384_v0 }
 0x42c   :  { %1262 = vmatpush3.bf16.msra.mxu1 %v1334_v58 }
 0x42d   :  { %1263 = vmatprep.subr.bf16.mxu1 %v1384_v0 }
 0x430   :  { %1264 = vmatpush3.bf16.msra.mxu1 %v1335_v59 }
 0x431   :  { %1265 = vmatprep.subr.bf16.mxu1 %v1384_v0  ;;  %v1038_v0 = vld [vmem:[%s1581_s5] ss:$0 sm:$0xff] }
 0x434   :  { %1266 = vmatpush3.bf16.msra.mxu1 %v1336_v60 }
 0x4d7   :  { %v703_v49 = vpop.f32.mrf.mxu1 }
 0x4d8   :  { %v704_v51 = vadd.f32 %v1019_v48, %v703_v49 }
 0x4d9   :  { %v1229_v50 = vpop.f32.mrf.mxu1 }
 0x4da   :  { %v710_v55 = vmax.f32 %v704_v51, 0.0 }
 0x4db   :  { %v706_v52 = vpop.f32.mrf.mxu1 }
 0x4dc   :  { %v707_v53 = vadd.f32 %v1019_v48, %v706_v52 }
 0x4dd   :  { %v1230_v54 = vpop.f32.mrf.mxu1 }
 0x4de   :  { %v711_v56 = vmax.f32 %v707_v53, 0.0 }
 0x4e0   :  { %v712_v57 = vpack.c.bf16 %v711_v56, %v710_v55 }
 0x4e2   :  { %1248 = vmatmul.mubr.bf16.vlgmr.msra.gmra.mxu0 %v712_v57 }
 0x5a2   :  { %v820_v62 = vpop.f32.mrf.mxu0 }
 0x5a3   :  { %v821_v1 = vadd.f32 %v1029_v61, %v820_v62 }
 0x5a4   :  { %v1249_v63 = vpop.f32.mrf.mxu0 }
 0x5a5   :  { %v827_v5 = vmax.f32 %v821_v1, 0.0 }
 0x5a6   :  { %v823_v2 = vpop.f32.mrf.mxu0 }
 0x5a7   :  { %v824_v3 = vadd.f32 %v1029_v61, %v823_v2 }
 0x5a8   :  { %v1250_v4 = vpop.f32.mrf.mxu0 }
 0x5a9   :  { %v828_v6 = vmax.f32 %v824_v3, 0.0 }
 0x5ab   :  { %v829_v7 = vpack.c.bf16 %v828_v6, %v827_v5 }
 0x5ad   :  { %1268 = vmatmul.mubr.bf16.vlgmr.msra.gmra.mxu1 %v829_v7 }
 0x66d   :  { %v935_v8 = vpop.f32.mrf.mxu1 }
 0x66e   :  { %v936_v9 = vadd.f32 %v1038_v0, %v935_v8 }
 0x66f   :  { %v1269_v10 = vpop.f32.mrf.mxu1 }
 0x670   :  { %v942_v11 = vmax.f32 %v936_v9, 0.0 }
 0x671   :  { %v938_v12 = vpop.f32.mrf.mxu1 }
 0x672   :  { %v1049_v13 = vpack.c.bf16 %v942_v11, %v942_v11  ;;  %v939_v14 = vadd.f32 %v1038_v0, %v938_v12 }
 0x673   :  { %v1270_v15 = vpop.f32.mrf.mxu1 }
 0x674   :  { %v943_v16 = vmax.f32 %v939_v14, 0.0  ;;  %953 = vst.msk [vmem:[#allocation5] sm:$0xf] %vm952_vm2, %v1049_v13 }
 0x676   :  { %v1050_v17 = vpack.c.bf16 %v943_v16, %v943_v16 }
 0x678   :  { %954 = vst.msk [vmem:[#allocation5 + $0x4] sm:$0xf] %vm952_vm2, %v1050_v17 }
 0x679   :  { %1368 = shalt.err (!%p1365_p9)
}
 0x67a   :  { %966 = dma.vmem_to_hbm [thread:$0]  %s961_s4, 128, %s1582_s6, [#allocation4], %s1382_s24, %s1382_s24, %s1383_s25  }
 0x67b   :  { %1379 = dma.done.wait [#allocation4], 128  }
 0x67c   :  { %1380 = vsyncadd [#allocation4], 4294967168 }
 0x67d   :  { %970 = vsyncpa [#allocation3], 1 }
 0x67e   :  { %971 = vsyncpa [#allocation4], 1 }

</bundles_post_ra>
